<compile_context>
chip_gen: v5e
topology: v5e:2x2
jax: 0.10.0
libtpu: 0.0.40
codegen_flags: <defaults>
</compile_context>

<pallas_src>
import jax
import jax.numpy as jnp
from jax import lax
from jax.experimental import pallas as pl
from jax.experimental.pallas import tpu as pltpu


# ---------------------------------------------------------------------------
# Kernel 1: streaming channel reduction (sum -> mean, max) over lane-dense
#           (B, C, H*W) input.
# ---------------------------------------------------------------------------
def _make_reduce_kernel(C, TC, TS):
    inv_c = 1.0 / float(C)
    CH = 8                                        # channels per reduction chunk
    n_loop = TC // CH if TC >= 2 * CH else 0      # fori_loop chunks; rest static

    def kernel(x_ref, avg_ref, max_ref, sum_sc, max_sc):
        # x_ref   : (1, TC, TS)  one channel-tile of one spatial strip
        # avg_ref : (1, 1, TS)   f32 output (mean over channels)
        # max_ref : (1, 1, TS)   f32 output (max over channels)
        # sum_sc / max_sc : (1, TS) f32 running reductions
        ci = pl.program_id(2)

        @pl.when(ci == 0)
        def _init():
            sum_sc[...] = jnp.zeros(sum_sc.shape, sum_sc.dtype)
            max_sc[...] = jnp.full(max_sc.shape, -jnp.inf, dtype=max_sc.dtype)

        s = sum_sc[...]
        m = max_sc[...]

        if n_loop > 0:
            def body(i, carry):
                s, m = carry
                start = pl.multiple_of(i * CH, CH)
                chunk = x_ref[0, pl.ds(start, CH)].astype(jnp.float32)  # (CH, TS)
                s = s + jnp.sum(chunk, axis=0, keepdims=True)
                m = jnp.maximum(m, jnp.max(chunk, axis=0, keepdims=True))
                return s, m

            s, m = lax.fori_loop(0, n_loop, body, (s, m), unroll=min(n_loop, 4))

        for c0 in range(n_loop * CH, TC, CH):       # static remainder (< 2*CH)
            cw = min(CH, TC - c0)
            chunk = x_ref[0, c0:c0 + cw].astype(jnp.float32)            # (cw, TS)
            s = s + jnp.sum(chunk, axis=0, keepdims=True)
            m = jnp.maximum(m, jnp.max(chunk, axis=0, keepdims=True))

        sum_sc[...] = s
        max_sc[...] = m

        @pl.when(ci == pl.num_programs(2) - 1)
        def _finalize():
            avg_ref[0] = s * inv_c                  # (1, TS)
            max_ref[0] = m

    return kernel


# ---------------------------------------------------------------------------
# Kernel 2: 7x7 conv (2 -> 1 channels, zero padding) + sigmoid, per batch.
# ---------------------------------------------------------------------------
def _make_conv_kernel(H, W, K):
    pad = K // 2
    Hp, Wp = H + 2 * pad, W + 2 * pad
    KK = K * K

    def kernel(w_ref, avg_ref, max_ref, o_ref, pad_sc):
        # w_ref   : (2*K*K,) f32 SMEM  -- avg-map taps, then max-map taps
        # avg_ref / max_ref : (1, 1, H, W) f32
        # o_ref   : (1, 1, H, W)
        # pad_sc  : (Hp, Wp) f32 zero-padded plane, reused for both maps
        acc = jnp.zeros((H, W), jnp.float32)
        for ch, m_ref in enumerate((avg_ref, max_ref)):   # avg map, then max map
            pad_sc[...] = jnp.zeros(pad_sc.shape, pad_sc.dtype)
            pad_sc[pad:pad + H, pad:pad + W] = m_ref[0, 0]
            plane = pad_sc[...]                           # (Hp, Wp)
            # K lane-shifted copies, reused across all kh taps of this map.
            cols = [plane[:, kw:kw + W] for kw in range(K)]   # each (Hp, W)
            for kh in range(K):
                for kw in range(K):
                    wt = w_ref[ch * KK + kh * K + kw]     # SMEM scalar tap
                    acc = acc + wt * cols[kw][kh:kh + H, :]
        o_ref[0, 0] = jax.nn.sigmoid(acc).astype(o_ref.dtype)

    return kernel


# ---------------------------------------------------------------------------
# Per-chip VMEM budget and tile selection (real padded footprints).
# ---------------------------------------------------------------------------
def _vmem_limit_bytes():
    cap = 64 << 20                       # conservative default (v7x physical)
    try:
        info = pltpu.get_tpu_info()
        cap = int(getattr(info, "vmem_capacity_bytes", cap)) or cap
    except Exception:
        pass
    # Leave headroom for compiler-internal scratch; never ask beyond 96 MiB
    # even on 128 MiB (v5e/v6e) parts.
    return int(min(cap * 3 // 4, 96 << 20))


def _pick_tiles(B, C, HW, itemsize, vmem_limit, n_buf=3):
    """Channel tile TC (sublane axis) and flattened-spatial tile TS (lane axis),
    sized against the padded VMEM footprint of the n_buf-buffered x block."""
    sublane = {4: 8, 2: 16, 1: 32}.get(itemsize, 8)

    # Spatial (lane) tile: multiple of 128 dividing H*W, else the full extent.
    if HW % 128 == 0:
        min_tiles = 2 if B < 2 else 1            # keep both v7x cores fed at B=1
        ts = HW
        for d in sorted((d for d in range(128, HW + 1, 128) if HW % d == 0),
                        reverse=True):
            if HW // d >= min_tiles:
                ts = d
                break
    else:
        ts = HW                                   # lane dim == full array dim
    ts_padded = -(-ts // 128) * 128

    # Channel tile: largest multiple-of-`sublane` divisor of C whose padded,
    # multi-buffered block fits the streaming budget (minus resident outputs,
    # f32 scratch accumulators and slack).
    fixed = 6 * 8 * ts_padded * 4 + (2 << 20)
    stream_budget = max(vmem_limit - fixed, 1 << 20)
    per_buf = stream_budget // n_buf
    max_tc = max(1, per_buf // (ts_padded * itemsize))

    if C % sublane == 0:
        tc = max(sublane, min(C, (max_tc // sublane) * sublane))
        while C % tc != 0:
            tc -= sublane
    else:
        tc = C                                    # small-C layers: whole extent
    return tc, ts


# ---------------------------------------------------------------------------
# Wrapper
# ---------------------------------------------------------------------------
def spatial_attention(x, weight, kernel_size=7):
    """x: (B, C, H, W); weight: (2, K, K) = Conv2d(2, 1, K, bias=False).weight
    with the singleton out-channel squeezed.  Returns (B, 1, H, W)."""
    B, C, H, W = x.shape
    K = kernel_size
    pad = K // 2
    Hp, Wp = H + 2 * pad, W + 2 * pad
    HW = H * W

    vmem_limit = _vmem_limit_bytes()
    TC, TS = _pick_tiles(B, C, HW, x.dtype.itemsize, vmem_limit)
    n_ct = C // TC
    n_st = HW // TS

    # ---- pass 1: lane-dense streaming channel reduction -> avg / max maps.
    x_flat = x.reshape(B, C, HW)                  # free, row-major
    reduce_kernel = _make_reduce_kernel(C, TC, TS)

    def run_reduce(buffer_depth):
        if buffer_depth is None:
            x_spec = pl.BlockSpec((1, TC, TS), lambda b, si, ci: (b, ci, si))
        else:
            x_spec = pl.BlockSpec((1, TC, TS), lambda b, si, ci: (b, ci, si),
                                  pipeline_mode=pl.Buffered(buffer_depth))
        return pl.pallas_call(
            reduce_kernel,
            out_shape=(jax.ShapeDtypeStruct((B, 1, HW), jnp.float32),
                       jax.ShapeDtypeStruct((B, 1, HW), jnp.float32)),
            grid=(B, n_st, n_ct),
            in_specs=[x_spec],
            out_specs=(pl.BlockSpec((1, 1, TS), lambda b, si, ci: (b, 0, si)),
                       pl.BlockSpec((1, 1, TS), lambda b, si, ci: (b, 0, si))),
            scratch_shapes=[pltpu.VMEM((1, TS), jnp.float32),
                            pltpu.VMEM((1, TS), jnp.float32)],
            compiler_params=pltpu.CompilerParams(
                dimension_semantics=("parallel", "parallel", "arbitrary"),
                vmem_limit_bytes=vmem_limit),
        )(x_flat)

    try:
        avg_flat, max_flat = run_reduce(3)        # 3-deep input pipeline
    except Exception:
        avg_flat, max_flat = run_reduce(None)     # default double buffering

    avg_map = avg_flat.reshape(B, 1, H, W)
    max_map = max_flat.reshape(B, 1, H, W)

    # ---- pass 2: 7x7 conv over the two maps + sigmoid, one batch per step.
    w_flat = weight.astype(jnp.float32).reshape(-1)       # (2*K*K,) SMEM taps

    return pl.pallas_call(
        _make_conv_kernel(H, W, K),
        out_shape=jax.ShapeDtypeStruct((B, 1, H, W), x.dtype),
        grid=(B,),
        in_specs=[
            pl.BlockSpec(memory_space=pltpu.MemorySpace.SMEM),        # taps
            pl.BlockSpec((1, 1, H, W), lambda b: (b, 0, 0, 0)),       # avg map
            pl.BlockSpec((1, 1, H, W), lambda b: (b, 0, 0, 0)),       # max map
        ],
        out_specs=pl.BlockSpec((1, 1, H, W), lambda b: (b, 0, 0, 0)),
        scratch_shapes=[pltpu.VMEM((Hp, Wp), jnp.float32)],
        compiler_params=pltpu.CompilerParams(
            dimension_semantics=("parallel",),
            vmem_limit_bytes=vmem_limit),
    )(w_flat, avg_map, max_map)


# ---------------------------------------------------------------------------
# Pure-JAX reference and self-test
# ---------------------------------------------------------------------------
def _reference(x, weight, kernel_size=7):
    avg = jnp.mean(x, axis=1, keepdims=True)
    mx = jnp.max(x, axis=1, keepdims=True)
    cat = jnp.concatenate([avg, mx], axis=1)               # (B, 2, H, W)
    w = weight[None]                                        # (1, 2, K, K) OIHW
    p = kernel_size // 2
    y = lax.conv_general_dilated(
        cat, w, window_strides=(1, 1), padding=((p, p), (p, p)),
        dimension_numbers=("NCHW", "OIHW", "NCHW"))
    return jax.nn.sigmoid(y)


if __name__ == "__main__":
    key = jax.random.PRNGKey(0)
    kx, kw = jax.random.split(key)

    B, C, H, W = 2, 4, 16, 16
    K = 7

    x = jax.random.normal(kx, (B, C, H, W), dtype=jnp.float32)
    # Conv2d(2, 1, 7, bias=False) weight without the singleton out-channel dim.
    fan_in = 2 * K * K
    bound = 1.0 / (fan_in ** 0.5)
    weight = jax.random.uniform(kw, (2, K, K), jnp.float32, -bound, bound)

    out = jax.block_until_ready(spatial_attention(x, weight, kernel_size=K))

    ref = _reference(x, weight, kernel_size=K)
    assert out.shape == (B, 1, H, W)
    assert jnp.allclose(out, ref, rtol=1e-5, atol=1e-5), "mismatch vs reference"

    print("KERNEL_OK")
</pallas_src>

<mosaic_0001>
module attributes {stable_mosaic.version = 11 : i64} {
  func.func @kernel(%arg0: i32, %arg1: i32, %arg2: i32, %arg3: memref<1x4x256xf32, #tpu.memory_space<vmem>>, %arg4: memref<1x1x256xf32, #tpu.memory_space<vmem>>, %arg5: memref<1x1x256xf32, #tpu.memory_space<vmem>>, %arg6: memref<1x256xf32, #tpu.memory_space<vmem>>, %arg7: memref<1x256xf32, #tpu.memory_space<vmem>>) attributes {dimension_semantics = [#tpu.dimension_semantics<parallel>, #tpu.dimension_semantics<parallel>, #tpu.dimension_semantics<arbitrary>], iteration_bounds = array<i64: 2, 1, 1>, scalar_prefetch = 0 : i64, scratch_operands = 2 : i64, tpu.core_type = #tpu.core_type<tc>, window_params = [{transform_indices = @transform_0, window_bounds = array<i64: 1, 4, 256>}, {transform_indices = @transform_1, window_bounds = array<i64: 1, 1, 256>}, {transform_indices = @transform_2, window_bounds = array<i64: 1, 1, 256>}]} {
    %c0_i32 = arith.constant 0 : i32
    %0 = arith.cmpi eq, %arg2, %c0_i32 : i32
    %1 = arith.extui %0 : i1 to i32
    %c0_i32_0 = arith.constant 0 : i32
    %2 = arith.cmpi ne, %1, %c0_i32_0 : i32
    scf.if %2 {
      %cst_14 = arith.constant 0.000000e+00 : f32
      %18 = vector.broadcast %cst_14 : f32 to vector<1x256xf32>
      %c0_15 = arith.constant 0 : index
      %c0_16 = arith.constant 0 : index
      %19 = vector.load %arg6[%c0_15, %c0_16] : memref<1x256xf32, #tpu.memory_space<vmem>>, vector<1x256xf32>
      tpu.vector_store %arg6[%c0_15, %c0_16], %18 {strides = array<i32>} : memref<1x256xf32, #tpu.memory_space<vmem>>, vector<1x256xf32>,
      %cst_17 = arith.constant 0xFF800000 : f32
      %20 = vector.broadcast %cst_17 : f32 to vector<1x256xf32>
      %c0_18 = arith.constant 0 : index
      %c0_19 = arith.constant 0 : index
      %21 = vector.load %arg7[%c0_18, %c0_19] : memref<1x256xf32, #tpu.memory_space<vmem>>, vector<1x256xf32>
      tpu.vector_store %arg7[%c0_18, %c0_19], %20 {strides = array<i32>} : memref<1x256xf32, #tpu.memory_space<vmem>>, vector<1x256xf32>,
    } else {
    }
    %c0 = arith.constant 0 : index
    %c0_1 = arith.constant 0 : index
    %3 = vector.load %arg6[%c0, %c0_1] : memref<1x256xf32, #tpu.memory_space<vmem>>, vector<1x256xf32>
    %c0_2 = arith.constant 0 : index
    %c0_3 = arith.constant 0 : index
    %4 = vector.load %arg7[%c0_2, %c0_3] : memref<1x256xf32, #tpu.memory_space<vmem>>, vector<1x256xf32>
    %c0_4 = arith.constant 0 : index
    %c0_5 = arith.constant 0 : index
    %c0_6 = arith.constant 0 : index
    %5 = vector.load %arg3[%c0_4, %c0_5, %c0_6] : memref<1x4x256xf32, #tpu.memory_space<vmem>>, vector<1x4x256xf32>
    %6 = vector.shape_cast %5 : vector<1x4x256xf32> to vector<4x256xf32>
    %cst = arith.constant dense<0.000000e+00> : vector<256xf32>
    %7 = vector.multi_reduction <add>, %6, %cst [0] : vector<4x256xf32> to vector<256xf32>
    %8 = vector.shape_cast %7 : vector<256xf32> to vector<1x256xf32>
    %9 = arith.addf %3, %8 : vector<1x256xf32>
    %cst_7 = arith.constant dense<0xFF800000> : vector<256xf32>
    %10 = vector.multi_reduction <maximumf>, %6, %cst_7 [0] : vector<4x256xf32> to vector<256xf32>
    %11 = vector.shape_cast %10 : vector<256xf32> to vector<1x256xf32>
    %12 = arith.maximumf %4, %11 : vector<1x256xf32>
    %c0_8 = arith.constant 0 : index
    %c0_9 = arith.constant 0 : index
    %13 = vector.load %arg6[%c0_8, %c0_9] : memref<1x256xf32, #tpu.memory_space<vmem>>, vector<1x256xf32>
    tpu.vector_store %arg6[%c0_8, %c0_9], %9 {strides = array<i32>} : memref<1x256xf32, #tpu.memory_space<vmem>>, vector<1x256xf32>,
    %c0_10 = arith.constant 0 : index
    %c0_11 = arith.constant 0 : index
    %14 = vector.load %arg7[%c0_10, %c0_11] : memref<1x256xf32, #tpu.memory_space<vmem>>, vector<1x256xf32>
    tpu.vector_store %arg7[%c0_10, %c0_11], %12 {strides = array<i32>} : memref<1x256xf32, #tpu.memory_space<vmem>>, vector<1x256xf32>,
    %c0_i32_12 = arith.constant 0 : i32
    %15 = arith.cmpi eq, %arg2, %c0_i32_12 : i32
    %16 = arith.extui %15 : i1 to i32
    %c0_i32_13 = arith.constant 0 : i32
    %17 = arith.cmpi ne, %16, %c0_i32_13 : i32
    scf.if %17 {
      %cst_14 = arith.constant 2.500000e-01 : f32
      %18 = vector.broadcast %cst_14 : f32 to vector<1x256xf32>
      %19 = arith.mulf %9, %18 : vector<1x256xf32>
      %c0_15 = arith.constant 0 : index
      %c0_16 = arith.constant 0 : index
      %c0_17 = arith.constant 0 : index
      %20 = vector.load %arg4[%c0_15, %c0_16, %c0_17] : memref<1x1x256xf32, #tpu.memory_space<vmem>>, vector<1x1x256xf32>
      %21 = vector.shape_cast %20 : vector<1x1x256xf32> to vector<1x256xf32>
      %22 = vector.shape_cast %19 : vector<1x256xf32> to vector<1x1x256xf32>
      tpu.vector_store %arg4[%c0_15, %c0_16, %c0_17], %22 {strides = array<i32>} : memref<1x1x256xf32, #tpu.memory_space<vmem>>, vector<1x1x256xf32>,
      %c0_18 = arith.constant 0 : index
      %c0_19 = arith.constant 0 : index
      %c0_20 = arith.constant 0 : index
      %23 = vector.load %arg5[%c0_18, %c0_19, %c0_20] : memref<1x1x256xf32, #tpu.memory_space<vmem>>, vector<1x1x256xf32>
      %24 = vector.shape_cast %23 : vector<1x1x256xf32> to vector<1x256xf32>
      %25 = vector.shape_cast %12 : vector<1x256xf32> to vector<1x1x256xf32>
      tpu.vector_store %arg5[%c0_18, %c0_19, %c0_20], %25 {strides = array<i32>} : memref<1x1x256xf32, #tpu.memory_space<vmem>>, vector<1x1x256xf32>,
    } else {
    }
    return
  }
  func.func @transform_0(%arg0: i32, %arg1: i32, %arg2: i32) -> (i32, i32, i32) {
    %c0_i32 = arith.constant 0 : i32
    return %arg0, %arg2, %arg1 : i32, i32, i32
  }
  func.func @transform_1(%arg0: i32, %arg1: i32, %arg2: i32) -> (i32, i32, i32) {
    %c0_i32 = arith.constant 0 : i32
    %c0_i32_0 = arith.constant 0 : i32
    return %arg0, %c0_i32, %arg1 : i32, i32, i32
  }
  func.func @transform_2(%arg0: i32, %arg1: i32, %arg2: i32) -> (i32, i32, i32) {
    %c0_i32 = arith.constant 0 : i32
    %c0_i32_0 = arith.constant 0 : i32
    return %arg0, %c0_i32, %arg1 : i32, i32, i32
  }
}

</mosaic_0001>

<bundles_post_ra>
// kernel: tpu_custom_call.1
= control target key start
LH: loop header
LB: loop body
LE: loop exit
PB: predicated region body
PF: predicated region fallthrough
CT: control target
= control target key end

     0   :  { %8 = vsyncpa [#allocation5], 0  ;;  %s854_s0 = inlined_call_operand.hbm [shape: f32[2,4,256], index: 0, kind: input, shape index: {}]   ;;  %s855_s1 = inlined_call_operand.hbm [shape: f32[2,1,256], index: 1, kind: output, shape index: {0}]   ;;  %s856_s2 = inlined_call_operand.hbm [shape: f32[2,1,256], index: 2, kind: output, shape index: {1}]  }
   0x1   :  { %10 = vsyncpa [#allocation5 + $0x1], 0 }
   0x2   :  { %11 = vsyncpa [#allocation6], 0 }
   0x3   :  { %13 = vsyncpa [#allocation6 + $0x1], 0 }
   0x4   :  { %14 = vsyncpa [#allocation9], 0 }
   0x5   :  { %16 = vsyncpa [#allocation9 + $0x1], 0  ;;  %s697_s9 = smov 0   ;;  %s699_s10 = smov 0  }
   0x6   :  { %s701_s11 = smov 0   ;;  %s703_s12 = smov 0  }
   0x7   :  { %s705_s13 = smov 0   ;;  %s707_s14 = smov 0  }
   0x8 LB: > { %s447_s15 = sadd.s32 4294967295, %s678_s14   ;;  %s448_s16 = sadd.s32 4294967294, %s678_s14   ;;  %s678_s14 = sphi %s707_s14, %s22_s14   ;;  %s674_s13 = sphi %s705_s13, %s867_s13   ;;  %s670_s12 = sphi %s703_s12, %s866_s12   ;;  %s666_s11 = sphi %s701_s11, %s865_s11   ;;  %s662_s10 = sphi %s699_s10, %s864_s10   ;;  %s658_s9 = sphi %s697_s9, %s863_s9  }
   0x9   : > { %s41_s17 = sadd.s32 1, %s674_s13  ;;  %s52_s18 = sadd.s32 1, %s666_s11 }
   0xa   : > { %p43_p0 = scmp.ge.s32.totalorder %s41_s17, 2  ;;  %p59_p1 = scmp.ne.s32.totalorder %s666_s11, %s662_s10 }
   0xb   : > { %p60_p2 = scmp.eq.s32.totalorder %s678_s14, 0  ;;  %p65_p3 = scmp.ne.s32.totalorder %s662_s10, %s658_s9 }
   0xc   : > { %s869_s17 = smov (%p43_p0, %s41_s17), 0  ;;  %p66_p5 = scmp.eq.s32.totalorder %s447_s15, 0 }
   0xd   : > { %p738_p4 = por %p60_p2, %p59_p1  ;;  %s45_s20 = ssub.s32 %s674_s13, %s869_s17 }
   0xe   : > { %p91_p6 = scmp.eq.s32.totalorder %s447_s15, 1  ;;  %p50_p7 = scmp.eq.s32.totalorder %s45_s20, 0 }
   0xf   : > { %p744_p8 = por %p66_p5, %p65_p3  ;;  %p97_p10 = scmp.eq.s32.totalorder %s448_s16, 1 }
  0x10   : > { %p748_p9 = por %p91_p6, %p59_p1  ;;  %p450_p12 = scmp.ge.s32.totalorder %s678_s14, 2 }
  0x11   : > { %s753_s23 = scalar_select %p50_p7, %s666_s11, %s52_s18  }
  0x12   : > { %p755_p11 = por %p97_p10, %p65_p3  ;;  %p482_p13 = scmp.lt.s32.totalorder %s678_s14, 2 }
  0x13   : > { %s145_s25 = sand.u32 1, %s666_s11   ;;  %s464_s27 = sshll.u32 %s674_s13, 3 }
  0x14   : > { %s451_s26 = sshll.u32 %s145_s25, 3  ;;  %s158_s30 = scalar_lea.hbm %s854_s0, %s464_s27 }
  0x15   : > { %s149_s3 = scalar_lea.vmem [#allocation4], %s451_s26  ;;  %s160_s5 = sshll.u32 %s158_s30, 4  ;;  %s161_s5 = int_to_ptr.hbm [resolvable:$true] %s160_s5 }
  0x16   : > { %s162_s4 = sshll.u32 %s149_s3, 4  ;;  %p472_p0 = pnand %p482_p13, %p738_p4  ;;  %s163_s4 = int_to_ptr.vmem [resolvable:$true] %s162_s4 }
  0x17   : > { %p454_p1 = scmp.ge.s32.totalorder %s678_s14, 1  ;;  %p167_p2 = scmp.lt.s32.totalorder %s678_s14, 3 }
  0x18   : > { %s146_s6 = scalar_lea.sflag [#allocation5], %s145_s25 }
  0x19   : > { %474 = dma.hbm_to_vmem [thread:$0]  (!%p472_p0), %s161_s5, 128, %s163_s4, %s146_s6  }
  0x1a   : > { %p168_p3 = pnand %p454_p1, %p167_p2 }
  0x1b   : > { %s771_s7 = sand.u32 (!%p168_p3), 1, %s662_s10  }
  0x1c   : > { %171 = sbr.rel (%p168_p3) target bundleno = 80 (0x50), region = 24  ;;  %s455_s8 = sshll.u32 (!%p168_p3), %s771_s7, 3 }
  0x1d   : > { %s174_s15 = scalar_lea.sflag (!%p168_p3), [#allocation5], %s771_s7  ;;  %s177_s16 = scalar_lea.vmem (!%p168_p3), [#allocation4], %s455_s8 }
  0x21   : > { %645 = dma.done.wait (%p744_p8), %s174_s15, 128  }
  0x22   : > { %647 = vsyncadd (%p744_p8), %s174_s15, 4294967168  ;;  %v211_v0 = vlaneseq  ;;  %v680_v2 = vmov 0.0   ;;  %v681_v3 = vmov -inf   ;;  %v219_v4 = vld [vmem:[%s177_s16] sm:$0xff]  ;;  %vm226_vm1 = vcmask 1043456   ;;  %s460_s18 = sshll.u32 %s670_s12, 1 }
  0x23   : > { %221 = vst [vmem:[#allocation1] ss:$2 sm:$0xff] %v219_v4  ;;  %s456_s19 = sshll.u32 %s771_s7, 1  ;;  %vm244_vm2 = vcmask 1040384   ;;  %s303_s25 = scalar_lea.hbm %s855_s1, %s460_s18 }
  0x24   : > { %vm779_vm0 = vcmp.lt.s32.totalorder %v211_v0, 256  ;;  %s196_s26 = scalar_lea.vmem [#allocation7], %s456_s19  ;;  %s307_s12 = sshll.u32 %s303_s25, 4  ;;  %s308_s12 = int_to_ptr.hbm [resolvable:$true] %s307_s12 }
  0x25   : > { %215 = vst.msk [vmem:[#allocation2] sm:$0x3] %vm779_vm0, %v680_v2  ;;  %s305_s27 = sshll.u32 %s196_s26, 4  ;;  %s319_s30 = scalar_lea.hbm %s856_s2, %s460_s18  ;;  %s306_s27 = int_to_ptr.vmem [resolvable:$true] %s305_s27 }
  0x26   : > { %216 = vst.msk [vmem:[#allocation3] sm:$0x3] %vm779_vm0, %v681_v3  ;;  %s203_s3 = scalar_lea.vmem [#allocation8], %s456_s19  ;;  %s286_s5 = scalar_lea.sflag [#allocation6], %s771_s7 }
  0x27   : > { %s321_s4 = sshll.u32 %s203_s3, 4  ;;  %s578_s6 = sshra.s32 %s308_s12, 4  ;;  %s579_s6 = int_to_ptr.hbm [resolvable:$true] %s578_s6  ;;  %s322_s4 = int_to_ptr.vmem [resolvable:$true] %s321_s4 }
  0x28   : > { %s580_s8 = scalar_lea.hbm %s579_s6, 2  ;;  %s584_s18 = scalar_lea.hbm %s855_s1, 4 }
  0x29   : > { %p581_p4 = scmp.ne.s32.totalorder %s579_s6, %s580_s8  ;;  %p585_p7 = scmp.lt.s32.totalorder %s579_s6, %s855_s1 }
  0x2a   : > { %v222_v5 = vld.sshfl [vmem:[#allocation1] sm:$0xff pattern:$0x75316420]  ;;  %v223_v6 = vld.sshfl [vmem:[#allocation1 + $0x8] sm:$0xff pattern:$0x75316420]  ;;  %p586_p8 = scmp.lt.s32.totalorder %s584_s18, %s580_s8 }
  0x2b   : > { %v227_v7 = vsel %vm226_vm1, %v222_v5, 0.0  ;;  %v234_v8 = vsel %vm226_vm1, %v223_v6, 0.0  ;;  %248 = vst [vmem:[#allocation1] ss:$2 sm:$0xff] %v219_v4  ;;  %p582_p5 = pnand %p581_p4, %p748_p9 }
  0x2c   : > { %v228_v9 = vrot.slane %v227_v7, 4  ;;  %v235_v10 = vrot.slane %v234_v8, 4  ;;  %v217_v29 = vld [vmem:[#allocation2] sm:$0x3]  ;;  %p587_p10 = por %p586_p8, %p585_p7 }
  0x2d   : > { %v218_v41 = vld [vmem:[#allocation3] sm:$0x3]  ;;  %p583_p6 = pneg %p582_p5 }
  0x2e   : > { %v229_v11 = vadd.f32 %v228_v9, %v227_v7  ;;  %v236_v12 = vadd.f32 %v235_v10, %v234_v8 }
  0x2f   : > { %p588_p13 = pnand %p587_p10, %p583_p6 }
  0x30   : > { %v230_v13 = vrot.slane %v229_v11, 2  ;;  %v237_v14 = vrot.slane %v236_v12, 2 }
  0x32   : > { %v231_v15 = vadd.f32 %v230_v13, %v229_v11  ;;  %v238_v16 = vadd.f32 %v237_v14, %v236_v12  ;;  %v249_v17 = vld.sshfl [vmem:[#allocation1] sm:$0xff pattern:$0x75316420]  ;;  %v250_v18 = vld.sshfl [vmem:[#allocation1 + $0x8] sm:$0xff pattern:$0x75316420] }
  0x33   : > { %v253_v19 = vsel %vm226_vm1, %v249_v17, -inf  ;;  %v260_v20 = vsel %vm226_vm1, %v250_v18, -inf }
  0x34   : > { %v232_v21 = vrot.slane %v231_v15, 1  ;;  %v239_v22 = vrot.slane %v238_v16, 1  ;;  %v254_v23 = vrot.slane %v253_v19, 4  ;;  %v261_v24 = vrot.slane %v260_v20, 4 }
  0x36   : > { %v240_v25 = vadd.f32 %v239_v22, %v238_v16  ;;  %v255_v26 = vmax.f32 %v253_v19, %v254_v23  ;;  %v262_v27 = vmax.f32 %v260_v20, %v261_v24  ;;  %v233_v28 = vadd.f32 %v232_v21, %v231_v15 }
  0x38   : > { %v243_v30 = vrot.slane %v240_v25, 7  ;;  %v256_v31 = vrot.slane %v255_v26, 2  ;;  %v263_v32 = vrot.slane %v262_v27, 2 }
  0x3a   : > { %v245_v33 = vsel %vm244_vm2, %v233_v28, %v243_v30  ;;  %v257_v34 = vmax.f32 %v255_v26, %v256_v31  ;;  %v264_v35 = vmax.f32 %v262_v27, %v263_v32 }
  0x3b   : > { %v247_v36 = vadd.f32 %v245_v33, %v217_v29 }
  0x3c   : > { %v258_v37 = vrot.slane %v257_v34, 1  ;;  %v265_v38 = vrot.slane %v264_v35, 1 }
  0x3d   : > { %277 = vst.msk [vmem:[#allocation2] sm:$0x3] %vm779_vm0, %v247_v36  ;;  %v282_v39 = vmul.f32 0.25, %v247_v36 }
  0x3e   : > { %v266_v40 = vmax.f32 %v264_v35, %v265_v38  ;;  %v259_v42 = vmax.f32 %v257_v34, %v258_v37 }
  0x3f   : > { %283 = vst.msk [vmem:[%s196_s26] sm:$0x3] %vm779_vm0, %v282_v39 }
  0x40   : > { %v269_v43 = vrot.slane %v266_v40, 7 }
  0x41   : > { %591 = shalt.err (!%p588_p13)
}
  0x42   : > { %467 = dma.vmem_to_hbm [thread:$0]  (%p748_p9), %s306_s27, 32, %s308_s12, %s286_s5   ;;  %v270_v44 = vsel %vm244_vm2, %v259_v42, %v269_v43 }
  0x43   : > { %s323_s19 = sshll.u32 %s319_s30, 4  ;;  %v272_v45 = vmax.f32 %v218_v41, %v270_v44  ;;  %s291_s25 = scalar_lea.sflag [#allocation9], %s771_s7  ;;  %s324_s19 = int_to_ptr.hbm [resolvable:$true] %s323_s19 }
  0x44   : > { %s606_s26 = sshra.s32 %s324_s19, 4  ;;  %s612_s29 = scalar_lea.hbm %s856_s2, 4  ;;  %s607_s26 = int_to_ptr.hbm [resolvable:$true] %s606_s26 }
  0x45   : > { %278 = vst.msk [vmem:[#allocation3] sm:$0x3] %vm779_vm0, %v272_v45  ;;  %s608_s28 = scalar_lea.hbm %s607_s26, 2  ;;  %p613_p3 = scmp.lt.s32.totalorder %s607_s26, %s856_s2 }
  0x46   : > { %284 = vst.msk [vmem:[%s203_s3] sm:$0x3] %vm779_vm0, %v272_v45  ;;  %p609_p0 = scmp.ne.s32.totalorder %s607_s26, %s608_s28  ;;  %p614_p4 = scmp.lt.s32.totalorder %s612_s29, %s608_s28 }
  0x48   : > { %p610_p1 = pnand %p609_p0, %p748_p9  ;;  %p615_p5 = por %p614_p4, %p613_p3 }
  0x4a   : > { %p611_p2 = pneg %p610_p1 }
  0x4c   : > { %p616_p6 = pnand %p615_p5, %p611_p2 }
  0x4e   : > { %619 = shalt.err (!%p616_p6)
}
  0x4f   : > { %468 = dma.vmem_to_hbm [thread:$0]  (%p748_p9), %s322_s4, 32, %s324_s19, %s291_s25  }
  0x50 PF: > { %s335_s7 = sand.u32 1, %s658_s9   ;;  %p476_p7 = pnand %p450_p12, %p755_p11 }
  0x51   : > { %s336_s3 = scalar_lea.sflag [#allocation6], %s335_s7 }
  0x52   : > { %p477_p8 = pneg %p476_p7 }
  0x54   : > { %649 = dma.done.wait (%p477_p8), %s336_s3, 32  }
  0x55   : > { %651 = vsyncadd (%p477_p8), %s336_s3, 4294967264  ;;  %s346_s6 = scalar_lea.sflag [#allocation9], %s335_s7 }
  0x56   : > { %653 = dma.done.wait (%p477_p8), %s346_s6, 32  }
  0x57   : > { %655 = vsyncadd (%p477_p8), %s346_s6, 4294967264  ;;  %s22_s14 = sadd.s32 1, %s678_s14   ;;  %s863_s9 = smov %s662_s10 }
  0x58   : > { %p19_p10 = scmp.ge.s32.totalorder %s22_s14, 4   ;;  %s864_s10 = smov %s666_s11 }
  0x59   : > { %s865_s11 = smov %s753_s23  ;;  %s866_s12 = smov %s674_s13 }
  0x5a   : > { %s867_s13 = smov %s869_s17  ;;  %21 = sbr.rel (!%p19_p10) target bundleno = 8 (0x8), region = 94 }
  0x5f   :  { %352 = vsyncpa [#allocation5], 1 }
  0x60   :  { %354 = vsyncpa [#allocation5 + $0x1], 1 }
  0x61   :  { %355 = vsyncpa [#allocation6], 1 }
  0x62   :  { %357 = vsyncpa [#allocation6 + $0x1], 1 }
  0x63   :  { %358 = vsyncpa [#allocation9], 1 }
  0x64   :  { %360 = vsyncpa [#allocation9 + $0x1], 1 }

</bundles_post_ra>
